<compile_context>
chip_gen: v5e
topology: v5e:2x2
jax: 0.10.0
libtpu: 0.0.40
codegen_flags: <defaults>
</compile_context>

<pallas_src>
import functools

import jax
import jax.numpy as jnp
from jax import lax
from jax.experimental import pallas as pl
from jax.experimental.pallas import tpu as pltpu


def _sublayer_connection_kernel(x_ref, w_ref, bw_ref, o_ref, *, eps, n_rows):
    """One (tm, F) row tile: out = x + (LayerNorm(x) @ W' + b')  (affine folded)."""
    x = x_ref[...].astype(jnp.float32)
    tm, feat = x.shape

    if n_rows is not None:
        # Ragged tail: zero rows past the true row count so the edge block never
        # produces inf/nan (its out-of-bounds writes are dropped by Pallas anyway).
        row = pl.program_id(0) * tm + lax.broadcasted_iota(jnp.int32, (tm, 1), 0)
        x = jnp.where(row < n_rows, x, 0.0)

    # --- LayerNorm (torch semantics: unbiased std, eps added to std) ---
    mean = jnp.mean(x, axis=-1, keepdims=True)
    diff = x - mean
    var = jnp.sum(diff * diff, axis=-1, keepdims=True) * (1.0 / (feat - 1))
    denom = jnp.sqrt(var) + eps
    inv0 = pl.reciprocal(denom, approx=True)          # EUP slot, not a VALU divide
    inv = inv0 * (2.0 - denom * inv0)                 # one Newton step -> ~exact
    ln = diff * inv                                   # a_2 / b_2 folded into W'/b'

    # --- sublayer Linear(F, F): bf16 operands on the MXU, f32 accumulate ---
    s = jnp.dot(ln.astype(w_ref.dtype), w_ref[...],
                preferred_element_type=jnp.float32)

    # --- dropout (eval mode => identity) + residual + folded bias ---
    o_ref[...] = (x + s + bw_ref[...]).astype(o_ref.dtype)


def _choose_row_tile(N, F, x_item, o_item, w_vmem_bytes, size_budget):
    # Target ~4 MiB of f32 x per tile (amortizes the ~0.35 us/step grid
    # overhead), clamped to [256, 2048] and a multiple of 256 (MXU-height,
    # sublane-aligned).  F is on the lane axis.
    tm = (4 * 1024 * 1024) // (4 * F)
    tm = max(256, min(2048, (tm // 256) * 256))
    # Trim to the VMEM budget (x and out tiles are double-buffered by Pallas).
    per_row = 2 * F * (x_item + o_item)
    avail = max(size_budget - w_vmem_bytes, 2 * 1024 * 1024)
    tm = min(tm, max(8, (avail // per_row) // 8 * 8))
    if tm >= N:
        if N >= 512:
            # Split into >= 2 blocks so both v7x TensorCores get work.
            tm = ((pl.cdiv(N, 2) + 7) // 8) * 8
        else:
            tm = N          # single full-extent block (always layout-legal)
    return int(tm)


def sublayer_connection(x, a_2, b_2, w, bw, *, eps=1e-6,
                        matmul_dtype=jnp.bfloat16, out_dtype=None):
    """x: (B, S, F). Returns x + Linear(LayerNorm(x)) (dropout = identity)."""
    B, S, F = x.shape
    N = B * S
    xr = x.reshape(N, F)
    out_dtype = x.dtype if out_dtype is None else out_dtype

    # Fold the LayerNorm affine into the linear (in f32, then cast to bf16):
    #   a_2*(diff*inv)+b_2 -> @W + bw  ==  (diff*inv) @ (a_2[:,None]*W) + (b_2@W + bw)
    w32 = w.astype(jnp.float32)
    w_c = (a_2.astype(jnp.float32)[:, None] * w32).astype(matmul_dtype)
    bw_c = (b_2.astype(jnp.float32) @ w32 + bw.astype(jnp.float32)).reshape(1, F)

    x_item = jnp.dtype(x.dtype).itemsize
    o_item = jnp.dtype(out_dtype).itemsize
    w_item = jnp.dtype(matmul_dtype).itemsize

    # Generation-aware VMEM budget (v7x: 64 MiB physical; v5e/v6e: 128 MiB).
    try:
        phys_vmem = pltpu.get_tpu_info().vmem_capacity_bytes
    except Exception:
        phys_vmem = 64 * 1024 * 1024            # conservative (v7x)
    size_budget = int(phys_vmem * 0.60)         # what our buffers aim to use
    limit_cap = int(phys_vmem * 0.75)           # hard cap handed to the compiler

    # Grid-invariant weight: single-buffer it once double-buffering is costly.
    single_buffer_w = (2 * F * F * w_item) > (4 * 1024 * 1024)
    w_bufs = 1 if single_buffer_w else 2
    w_vmem_bytes = w_bufs * F * F * w_item + 2 * F * 4   # + folded bias (f32)

    tm = _choose_row_tile(N, F, x_item, o_item, w_vmem_bytes, size_budget)
    grid = (pl.cdiv(N, tm),)
    n_rows = N if (N % tm) != 0 else None       # static: mask only when ragged

    kernel = functools.partial(_sublayer_connection_kernel, eps=eps, n_rows=n_rows)

    cost = pl.CostEstimate(
        flops=2 * N * F * F + 6 * N * F,
        transcendentals=2 * N,                  # sqrt + reciprocal per row
        bytes_accessed=N * F * (x_item + o_item) + F * F * w_item + F * 4,
    )

    vmem_est = 2 * tm * F * (x_item + o_item) + w_vmem_bytes
    vmem_limit = None
    if vmem_est > 12 * 1024 * 1024:
        # Leave headroom for compiler scratch/spill; never above 75% of physical.
        vmem_limit = int(min(max(vmem_est + (4 << 20), 16 << 20), limit_cap))

    w_spec_kwargs = {}
    if single_buffer_w:
        # Fetched once (constant index_map); one VMEM buffer is enough.
        w_spec_kwargs = dict(pipeline_mode=pl.Buffered(1))

    out = pl.pallas_call(
        kernel,
        out_shape=jax.ShapeDtypeStruct((N, F), out_dtype),
        grid_spec=pl.GridSpec(
            grid=grid,
            in_specs=[
                pl.BlockSpec((tm, F), lambda i: (i, 0)),                  # x rows
                pl.BlockSpec((F, F), lambda i: (0, 0), **w_spec_kwargs),  # W' (bf16)
                pl.BlockSpec((1, F), lambda i: (0, 0)),                   # b' (f32)
            ],
            out_specs=pl.BlockSpec((tm, F), lambda i: (i, 0)),
        ),
        compiler_params=pltpu.CompilerParams(
            dimension_semantics=("parallel",),
            vmem_limit_bytes=vmem_limit),
        cost_estimate=cost,
    )(xr, w_c, bw_c)

    return out.reshape(B, S, F)


def _reference(x, a_2, b_2, w, bw, eps=1e-6):
    x32 = x.astype(jnp.float32)
    feat = x.shape[-1]
    mean = jnp.mean(x32, axis=-1, keepdims=True)
    diff = x32 - mean
    var = jnp.sum(diff * diff, axis=-1, keepdims=True) / (feat - 1)
    std = jnp.sqrt(var)
    ln = a_2 * diff / (std + eps) + b_2
    s = ln @ w + bw
    return (x32 + s).astype(x.dtype)


if __name__ == "__main__":
    F = 128
    key = jax.random.PRNGKey(0)
    kx, kw, kb, kx2, kx3 = jax.random.split(key, 5)

    # LayerNorm params exactly as in __init__: ones / zeros.
    a_2 = jnp.ones((F,), dtype=jnp.float32)
    b_2 = jnp.zeros((F,), dtype=jnp.float32)

    # Deterministic sublayer (Linear F->F) weights.
    w = jax.random.normal(kw, (F, F), dtype=jnp.float32) * (1.0 / F ** 0.5)
    bw = jax.random.normal(kb, (F,), dtype=jnp.float32) * 0.02

    # bf16 MXU operands -> widened tolerance vs the f32 reference.
    TOL = dict(atol=5e-2, rtol=5e-2)

    # Case 1: small canonical shape (single full-extent block).
    B, S = 2, 8
    x = jax.random.normal(kx, (B, S, F), dtype=jnp.float32)
    out = jax.block_until_ready(sublayer_connection(x, a_2, b_2, w, bw))
    ref = _reference(x, a_2, b_2, w, bw)
    assert out.shape == (B, S, F)
    assert bool(jnp.all(jnp.isfinite(out)))
    assert jnp.allclose(out, ref, **TOL), "mismatch (case 1)"

    # Case 2: non-multiple-of-8 row count, still one full-extent block.
    B2, S2 = 3, 100
    x2 = jax.random.normal(kx2, (B2, S2, F), dtype=jnp.float32)
    out2 = jax.block_until_ready(sublayer_connection(x2, a_2, b_2, w, bw))
    ref2 = _reference(x2, a_2, b_2, w, bw)
    assert out2.shape == (B2, S2, F)
    assert bool(jnp.all(jnp.isfinite(out2)))
    assert jnp.allclose(out2, ref2, **TOL), "mismatch (case 2)"

    # Case 3: multi-block grid with a ragged edge block (exercises the
    # cdiv-grid + in-kernel tail-mask path and the >=2-block megacore split).
    B3, S3 = 2, 300
    x3 = jax.random.normal(kx3, (B3, S3, F), dtype=jnp.float32)
    out3 = jax.block_until_ready(sublayer_connection(x3, a_2, b_2, w, bw))
    ref3 = _reference(x3, a_2, b_2, w, bw)
    assert out3.shape == (B3, S3, F)
    assert bool(jnp.all(jnp.isfinite(out3)))
    assert jnp.allclose(out3, ref3, **TOL), "mismatch (case 3)"

    print("KERNEL_OK")
</pallas_src>

<mosaic_0001>
module attributes {stable_mosaic.version = 11 : i64} {
  func.func @_sublayer_connection_kernel(%arg0: i32, %arg1: memref<16x128xf32, #tpu.memory_space<vmem>>, %arg2: memref<128x128xbf16, #tpu.memory_space<vmem>>, %arg3: memref<1x128xf32, #tpu.memory_space<vmem>>, %arg4: memref<16x128xf32, #tpu.memory_space<vmem>>) attributes {dimension_semantics = [#tpu.dimension_semantics<parallel>], iteration_bounds = array<i64: 1>, scalar_prefetch = 0 : i64, scratch_operands = 0 : i64, tpu.core_type = #tpu.core_type<tc>, window_params = [{transform_indices = @transform_0, window_bounds = array<i64: 16, 128>}, {pipeline_mode = #tpu.pipeline_mode<synchronous>, transform_indices = @transform_1, window_bounds = array<i64: 128, 128>}, {pipeline_mode = #tpu.pipeline_mode<synchronous>, transform_indices = @transform_2, window_bounds = array<i64: 1, 128>}, {transform_indices = @transform_3, window_bounds = array<i64: 16, 128>}]} {
    %c0 = arith.constant 0 : index
    %c0_0 = arith.constant 0 : index
    %0 = vector.load %arg1[%c0, %c0_0] : memref<16x128xf32, #tpu.memory_space<vmem>>, vector<16x128xf32>
    %cst = arith.constant dense<0.000000e+00> : vector<16xf32>
    %1 = vector.multi_reduction <add>, %0, %cst [1] : vector<16x128xf32> to vector<16xf32>
    %2 = vector.shape_cast %1 : vector<16xf32> to vector<16x1xf32>
    %cst_1 = arith.constant 1.280000e+02 : f32
    %3 = vector.broadcast %cst_1 : f32 to vector<16x1xf32>
    %4 = arith.divf %2, %3 : vector<16x1xf32>
    %5 = vector.broadcast %4 : vector<16x1xf32> to vector<16x128xf32>
    %6 = arith.subf %0, %5 : vector<16x128xf32>
    %7 = arith.mulf %6, %6 : vector<16x128xf32>
    %cst_2 = arith.constant dense<0.000000e+00> : vector<16xf32>
    %8 = vector.multi_reduction <add>, %7, %cst_2 [1] : vector<16x128xf32> to vector<16xf32>
    %9 = vector.shape_cast %8 : vector<16xf32> to vector<16x1xf32>
    %cst_3 = arith.constant 0.00787401571 : f32
    %10 = vector.broadcast %cst_3 : f32 to vector<16x1xf32>
    %11 = arith.mulf %9, %10 : vector<16x1xf32>
    %12 = math.sqrt %11 : vector<16x1xf32>
    %cst_4 = arith.constant 9.99999997E-7 : f32
    %13 = vector.broadcast %cst_4 : f32 to vector<16x1xf32>
    %14 = arith.addf %12, %13 : vector<16x1xf32>
    %15 = tpu.reciprocal %14 {approx = true} : vector<16x1xf32> -> vector<16x1xf32>
    %16 = arith.mulf %14, %15 : vector<16x1xf32>
    %cst_5 = arith.constant 2.000000e+00 : f32
    %17 = vector.broadcast %cst_5 : f32 to vector<16x1xf32>
    %18 = arith.subf %17, %16 : vector<16x1xf32>
    %19 = arith.mulf %15, %18 : vector<16x1xf32>
    %20 = vector.broadcast %19 : vector<16x1xf32> to vector<16x128xf32>
    %21 = arith.mulf %6, %20 : vector<16x128xf32>
    %22 = arith.truncf %21 : vector<16x128xf32> to vector<16x128xbf16>
    %c0_6 = arith.constant 0 : index
    %c0_7 = arith.constant 0 : index
    %23 = vector.load %arg2[%c0_6, %c0_7] : memref<128x128xbf16, #tpu.memory_space<vmem>>, vector<128x128xbf16>
    %cst_8 = arith.constant dense<0.000000e+00> : vector<16x128xf32>
    %24 = tpu.matmul %22, %23, %cst_8 {dimension_numbers = #tpu.dot_dimension_numbers<[1], [0], [0], [1], [0, 0, 1, 1], [], []>} : vector<16x128xbf16>, vector<128x128xbf16>, vector<16x128xf32> -> vector<16x128xf32>
    %25 = arith.addf %0, %24 : vector<16x128xf32>
    %c0_9 = arith.constant 0 : index
    %c0_10 = arith.constant 0 : index
    %26 = vector.load %arg3[%c0_9, %c0_10] : memref<1x128xf32, #tpu.memory_space<vmem>>, vector<1x128xf32>
    %27 = vector.broadcast %26 : vector<1x128xf32> to vector<16x128xf32>
    %28 = arith.addf %25, %27 : vector<16x128xf32>
    %c0_11 = arith.constant 0 : index
    %c0_12 = arith.constant 0 : index
    %29 = vector.load %arg4[%c0_11, %c0_12] : memref<16x128xf32, #tpu.memory_space<vmem>>, vector<16x128xf32>
    tpu.vector_store %arg4[%c0_11, %c0_12], %28 {strides = array<i32>} : memref<16x128xf32, #tpu.memory_space<vmem>>, vector<16x128xf32>,
    return
  }
  func.func @transform_0(%arg0: i32) -> (i32, i32) {
    %c0_i32 = arith.constant 0 : i32
    %c0_i32_0 = arith.constant 0 : i32
    return %arg0, %c0_i32 : i32, i32
  }
  func.func @transform_1(%arg0: i32) -> (i32, i32) {
    %c0_i32 = arith.constant 0 : i32
    %c0_i32_0 = arith.constant 0 : i32
    %c0_i32_1 = arith.constant 0 : i32
    return %c0_i32, %c0_i32_0 : i32, i32
  }
  func.func @transform_2(%arg0: i32) -> (i32, i32) {
    %c0_i32 = arith.constant 0 : i32
    %c0_i32_0 = arith.constant 0 : i32
    %c0_i32_1 = arith.constant 0 : i32
    return %c0_i32, %c0_i32_0 : i32, i32
  }
  func.func @transform_3(%arg0: i32) -> (i32, i32) {
    %c0_i32 = arith.constant 0 : i32
    %c0_i32_0 = arith.constant 0 : i32
    return %arg0, %c0_i32 : i32, i32
  }
}

</mosaic_0001>

<bundles_post_ra>
// kernel: tpu_custom_call.1
= control target key start
LH: loop header
LB: loop body
LE: loop exit
PB: predicated region body
PF: predicated region fallthrough
CT: control target
= control target key end

     0   :  { %8 = vsyncpa [#allocation3], 0  ;;  %s415_s0 = inlined_call_operand.hbm [shape: f32[16,128], index: 0, kind: input, shape index: {}]   ;;  %s416_s1 = inlined_call_operand.hbm [shape: bf16[128,128], index: 1, kind: input, shape index: {}]   ;;  %s417_s2 = inlined_call_operand.vmem [shape: f32[1,128], index: 2, kind: input, shape index: {}]   ;;  %s418_s3 = inlined_call_operand.hbm [shape: f32[16,128], index: 3, kind: output, shape index: {}]  }
   0x1   :  { %9 = vsyncpa [#allocation6], 0 }
   0x2   :  { %10 = vsyncpa [#allocation4], 0  ;;  %s15_s14 = sshll.u32 %s415_s0, 4  ;;  %s354_s15 = smov [#allocation2]   ;;  %s16_s14 = int_to_ptr.hbm [resolvable:$true] %s15_s14 }
   0x3   :  { %s17_s16 = sshll.u32 %s354_s15, 4  ;;  %s28_s19 = sshll.u32 %s416_s1, 4  ;;  %s18_s16 = int_to_ptr.vmem [resolvable:$true] %s17_s16  ;;  %s29_s19 = int_to_ptr.hbm [resolvable:$true] %s28_s19 }
   0x4   :  { %s355_s20 = smov 128   ;;  %s356_s21 = smov 8  }
   0x5   :  { %23 = dma.hbm_to_vmem [thread:$0]  %s16_s14, 256, %s18_s16, [#allocation3], %s355_s20, %s355_s20, %s356_s21  }
   0x6   :  { %s357_s22 = smov [#allocation5]   ;;  %s358_s24 = smov 64  }
   0x7   :  { %s30_s23 = sshll.u32 %s357_s22, 4  ;;  %s359_s0 = smov 4   ;;  %s31_s23 = int_to_ptr.vmem [resolvable:$true] %s30_s23 }
   0x8   :  { %36 = dma.hbm_to_vmem [thread:$0]  %s29_s19, 1024, %s31_s23, [#allocation6], %s358_s24, %s358_s24, %s359_s0  }
   0x9   :  { %348 = dma.done.wait [#allocation3], 256  }
   0xa   :  { %349 = vsyncadd [#allocation3], 4294967040 }
   0xb   :  { %350 = dma.done.wait [#allocation6], 1024  }
   0xc   :  { %351 = vsyncadd [#allocation6], 4294966272  ;;  %v391_v0 = vld [vmem:[#allocation2] sm:$0xff]  ;;  %v394_v1 = vld [vmem:[#allocation2 + $0x8] sm:$0xff]  ;;  %v360_v2 = vmov 128.0   ;;  %s361_s26 = smov [#allocation7]  }
   0xd   :  { %49 = vadd.xlane.f32.xlu0 %v391_v0  ;;  %266 = vrcp.f32 %v360_v2  ;;  %v256_v17 = vld [vmem:[#allocation5 + $0x38] sm:$0xff]  ;;  %v255_v18 = vld [vmem:[#allocation5 + $0x30] sm:$0xff]  ;;  %v254_v19 = vld [vmem:[#allocation5 + $0x28] sm:$0xff]  ;;  %s201_s27 = sshll.u32 %s361_s26, 4  ;;  %s203_s30 = sshll.u32 %s418_s3, 4  ;;  %s202_s27 = int_to_ptr.vmem [resolvable:$true] %s201_s27  ;;  %s204_s30 = int_to_ptr.hbm [resolvable:$true] %s203_s30 }
   0xe   :  { %173 = vmatpush.bf16.msra.mxu0 %v256_v17  ;;  %v253_v20 = vld [vmem:[#allocation5 + $0x20] sm:$0xff]  ;;  %v252_v21 = vld [vmem:[#allocation5 + $0x18] sm:$0xff]  ;;  %v251_v22 = vld [vmem:[#allocation5 + $0x10] sm:$0xff] }
   0xf   :  { %v250_v25 = vld [vmem:[#allocation5 + $0x8] sm:$0xff]  ;;  %v249_v26 = vld [vmem:[#allocation5] sm:$0xff]  ;;  %v265_v62 = vld [vmem:[%s417_s2] ss:$0 sm:$0xff] }
  0x12   :  { %174 = vmatpush.bf16.msra.mxu0 %v255_v18 }
  0x13   :  { %v267_v3 = vpop.eup %266 }
  0x14   :  { %v54_v4 = vmul.f32 128.0, %v267_v3  ;;  %vm58_vm0 = vweird.f32 %v267_v3 }
  0x15   :  { %51 = vadd.xlane.f32.xlu0 %v394_v1 }
  0x16   :  { %v55_v5 = vsub.f32 1.0, %v54_v4  ;;  %175 = vmatpush.bf16.msra.mxu0 %v254_v19 }
  0x18   :  { %v56_v6 = vmul.f32 %v267_v3, %v55_v5 }
  0x1a   :  { %v57_v7 = vadd.f32 %v267_v3, %v56_v6  ;;  %176 = vmatpush.bf16.msra.mxu0 %v253_v20 }
  0x1c   :  { %v59_v8 = vsel %vm58_vm0, %v267_v3, %v57_v7 }
  0x1e   :  { %177 = vmatpush.bf16.msra.mxu0 %v252_v21 }
  0x22   :  { %178 = vmatpush.bf16.msra.mxu0 %v251_v22 }
  0x26   :  { %179 = vmatpush.bf16.msra.mxu0 %v250_v25 }
  0x2a   :  { %180 = vmatpush.bf16.msra.mxu0 %v249_v26 }
  0x80   :  { %v50_v9 = vpop.xlane.xlu0 %49 }
  0x81   :  { %v60_v10 = vmul.f32 %v59_v8, %v50_v9 }
  0x83   :  { %v398_v11 = vsub.f32 %v391_v0, %v60_v10 }
  0x85   :  { %v64_v12 = vmul.f32 %v398_v11, %v398_v11 }
  0x87   :  { %66 = vadd.xlane.f32.xlu1 %v64_v12 }
  0x88   :  { %v52_v13 = vpop.xlane.xlu0 %51 }
  0x89   :  { %v61_v14 = vmul.f32 %v59_v8, %v52_v13 }
  0x8b   :  { %v63_v15 = vsub.f32 %v394_v1, %v61_v14 }
  0x8d   :  { %v65_v16 = vmul.f32 %v63_v15, %v63_v15 }
  0x8f   :  { %68 = vadd.xlane.f32.xlu1 %v65_v16 }
  0xfa   :  { %v67_v23 = vpop.xlane.xlu1 %66 }
  0xfb   :  { %v70_v24 = vmul.f32 0.007874016, %v67_v23 }
  0xfd   :  { %268 = vrsqrt.f32 %v70_v24  ;;  %vm79_vm1 = vcmp.eq.f32.partialorder %v70_v24, inf  ;;  %v82_v39 = vand.u32 2147483648, %v70_v24  ;;  %vm81_vm2 = vcmp.eq.f32.partialorder %v70_v24, 0.0 }
 0x102   :  { %v69_v27 = vpop.xlane.xlu1 %68 }
 0x103   :  { %v269_v28 = vpop.eup %268  ;;  %v71_v29 = vmul.f32 0.007874016, %v69_v27 }
 0x104   :  { %v73_v30 = vmul.f32 %v269_v28, %v70_v24 }
 0x105   :  { %270 = vrsqrt.f32 %v71_v29  ;;  %vm91_vm3 = vcmp.eq.f32.partialorder %v71_v29, inf  ;;  %v94_v47 = vand.u32 2147483648, %v71_v29  ;;  %vm93_vm4 = vcmp.eq.f32.partialorder %v71_v29, 0.0 }
 0x106   :  { %v74_v31 = vmul.f32 %v269_v28, %v73_v30 }
 0x108   :  { %v75_v32 = vmul.f32 0.5, %v74_v31 }
 0x10a   :  { %v76_v33 = vsub.f32 1.5, %v75_v32 }
 0x10b   :  { %v271_v34 = vpop.eup %270 }
 0x10c   :  { %v77_v35 = vmul.f32 %v269_v28, %v76_v33  ;;  %v85_v36 = vmul.f32 %v271_v34, %v71_v29 }
 0x10e   :  { %v78_v37 = vmul.f32 %v77_v35, %v70_v24  ;;  %v86_v38 = vmul.f32 %v271_v34, %v85_v36 }
 0x110   :  { %v80_v40 = vsel %vm79_vm1, %v70_v24, %v78_v37  ;;  %v87_v41 = vmul.f32 0.5, %v86_v38 }
 0x111   :  { %v83_v42 = vsel %vm81_vm2, %v82_v39, %v80_v40 }
 0x112   :  { %v88_v43 = vsub.f32 1.5, %v87_v41  ;;  %v96_v44 = vadd.f32 1e-06, %v83_v42 }
 0x114   :  { %v89_v45 = vmul.f32 %v271_v34, %v88_v43  ;;  %272 = vrcp.f32 %v96_v44 }
 0x116   :  { %v90_v46 = vmul.f32 %v89_v45, %v71_v29 }
 0x118   :  { %v92_v48 = vsel %vm91_vm3, %v71_v29, %v90_v46 }
 0x119   :  { %v95_v49 = vsel %vm93_vm4, %v94_v47, %v92_v48 }
 0x11a   :  { %v273_v50 = vpop.eup %272  ;;  %v97_v51 = vadd.f32 1e-06, %v95_v49 }
 0x11b   :  { %v100_v52 = vmul.f32 %v273_v50, %v96_v44 }
 0x11c   :  { %274 = vrcp.f32 %v97_v51 }
 0x11d   :  { %v102_v53 = vsub.f32 2.0, %v100_v52 }
 0x11f   :  { %v104_v57 = vmul.f32 %v273_v50, %v102_v53 }
 0x121   :  { %v106_v59 = vmul.f32 %v104_v57, %v398_v11 }
 0x122   :  { %v275_v54 = vpop.eup %274 }
 0x123   :  { %v101_v55 = vmul.f32 %v275_v54, %v97_v51 }
 0x125   :  { %v103_v56 = vsub.f32 2.0, %v101_v55 }
 0x127   :  { %v105_v58 = vmul.f32 %v275_v54, %v103_v56 }
 0x129   :  { %v107_v60 = vmul.f32 %v105_v58, %v63_v15 }
 0x12b   :  { %v108_v61 = vpack.c.bf16 %v107_v60, %v106_v59 }
 0x12d   :  { %181 = vmatmul.bf16.vlgmr.msra.gmra.mxu0 %v108_v61 }
 0x1aa   :  { %v182_v63 = vpop.f32.mrf.mxu0 }
 0x1ab   :  { %v187_v2 = vadd.f32 %v182_v63, %v391_v0 }
 0x1ad   :  { %v193_v3 = vadd.f32 %v265_v62, %v187_v2 }
 0x1af   :  { %195 = vst [vmem:[#allocation7] sm:$0xff] %v193_v3 }
 0x1b2   :  { %v184_v4 = vpop.f32.mrf.mxu0 }
 0x1b3   :  { %v188_v5 = vadd.f32 %v184_v4, %v394_v1 }
 0x1b5   :  { %v194_v6 = vadd.f32 %v265_v62, %v188_v5 }
 0x1b7   :  { %196 = vst [vmem:[#allocation7 + $0x8] sm:$0xff] %v194_v6 }
 0x1b8   :  { %209 = dma.vmem_to_hbm [thread:$0]  %s202_s27, 256, %s204_s30, [#allocation4], %s355_s20, %s355_s20, %s356_s21  }
 0x1b9   :  { %352 = dma.done.wait [#allocation4], 256  }
 0x1ba   :  { %353 = vsyncadd [#allocation4], 4294967040 }
 0x1bb   :  { %214 = vsyncpa [#allocation3], 1 }
 0x1bc   :  { %215 = vsyncpa [#allocation6], 1 }
 0x1bd   :  { %216 = vsyncpa [#allocation4], 1 }

</bundles_post_ra>
